<compile_context>
chip_gen: v7x
topology: tpu7x:2x2x1
jax: 0.10.0
libtpu: 0.0.40
codegen_flags: <defaults>
</compile_context>

<pallas_src>
import numpy as np
import jax
import jax.numpy as jnp
from jax.experimental import pallas as pl
from jax.experimental.pallas import tpu as pltpu

_HEAD_PAD = 128      # lane-dense dueling-head width (col 0 = V, cols 1..A = advantages)
_SUBLANE = 8         # f32 sublane tile height


def _round_up(x, m):
    return (x + m - 1) // m * m


# ---------------------------------------------------------------------------
# Fused kernel: both ConvBlocks, both Linears and the merged/padded dueling
# head run in one grid step; one grid step == one state of the batch.
# Every intermediate activation stays in VMEM/vregs.
# ---------------------------------------------------------------------------
def _make_fused_kernel(n_convs, n_linears, n_taps):
    def kernel(*refs):
        # refs = [x, (G_cat, W_cat, b) * n_convs, (W, b) * n_linears,
        #         head_W, head_b, out]
        x_ref = refs[0]
        pos = 1
        conv_refs = []
        for _ in range(n_convs):
            conv_refs.append((refs[pos], refs[pos + 1], refs[pos + 2]))
            pos += 3
        lin_refs = []
        for _ in range(n_linears):
            lin_refs.append((refs[pos], refs[pos + 1]))
            pos += 2
        hw_ref, hb_ref, out_ref = refs[pos], refs[pos + 1], refs[pos + 2]

        f32 = jnp.float32
        act = x_ref[0]                                    # (cin_pad, H*W) channels-first

        # --- ConvBlocks: 2 MXU matmuls each, fused LeakyReLU(0.01) ------------
        for g_ref, wcat_ref, b_ref in conv_refs:
            ohw = g_ref.shape[1] // n_taps
            # One wide gather matmul (G is a 0/1 matrix, exact in bf16):
            #   (cin_pad, HW) @ (HW, n_taps*OHW) -> (cin_pad, n_taps*OHW)
            gathered = jnp.dot(act.astype(jnp.bfloat16), g_ref[...],
                               preferred_element_type=f32)
            # im2col: stack the tap blocks along sublanes; each block is a whole
            # 8-row f32 tile because cin is padded to 8 -> (n_taps*cin_pad, OHW)
            im2col = jnp.concatenate(
                [gathered[:, t * ohw:(t + 1) * ohw] for t in range(n_taps)],
                axis=0)
            # One weight matmul: (cout, n_taps*cin_pad) @ (n_taps*cin_pad, OHW)
            z = jnp.dot(wcat_ref[...], im2col, preferred_element_type=f32) + b_ref[...]
            act = jnp.maximum(z, 0.01 * z)                # LeakyReLU, one VPU op fewer

        # act is (C_last, OH*OW) == torch `.flatten(start_dim=-2)` — no transpose.

        # --- Linear stack (no activation between them, per the module) -------
        feat = act
        for w_ref, b_ref in lin_refs:
            feat = jnp.dot(feat, w_ref[...], preferred_element_type=f32) + b_ref[...]

        # --- Dueling head: merged V/A matmul, lane-dense 128-wide slab --------
        out_ref[0] = jnp.dot(feat, hw_ref[...], preferred_element_type=f32) + hb_ref[...]

    return kernel


# ---------------------------------------------------------------------------
# Host-side packing: torch layouts -> kernel operands (done once)
# ---------------------------------------------------------------------------
def _gather_cat(h, w, kh, kw, stride, pad):
    """0/1 matrix G_cat (h*w, kh*kw*oh*ow): column (t*oh*ow + r*ow + c) of
    x_flat @ G_cat is the input pixel under kernel tap t=(di,dj) at output
    position (r, c), or zero where the tap falls in the zero padding."""
    oh = (h + 2 * pad - kh) // stride + 1
    ow = (w + 2 * pad - kw) // stride + 1
    ohw = oh * ow
    g = np.zeros((h * w, kh * kw * ohw), np.float32)
    for di in range(kh):
        for dj in range(kw):
            t = di * kw + dj
            for r in range(oh):
                hh = stride * r + di - pad
                if not (0 <= hh < h):
                    continue
                for c in range(ow):
                    ww = stride * c + dj - pad
                    if 0 <= ww < w:
                        g[hh * w + ww, t * ohw + r * ow + c] = 1.0
    return jnp.asarray(g, dtype=jnp.bfloat16), oh, ow     # 0/1 is exact in bf16


def pack_params(params, spatial_hw, conv_pad=1):
    h, w = spatial_hw
    ops, flops = [], 0
    n_taps_all = None
    cin_pad_first = None
    for li, (wconv, bconv, stride) in enumerate(params["convs"]):
        cout, cin, kh, kw = wconv.shape
        n_taps = kh * kw
        if n_taps_all is None:
            n_taps_all = n_taps
        assert n_taps == n_taps_all, "all convs assumed same kernel size (true for Net)"
        cin_pad = _round_up(cin, _SUBLANE)
        if li == 0:
            cin_pad_first = cin_pad
        else:
            assert cin == cin_pad, "inner conv in-channels must be a multiple of 8"
        g_cat, oh, ow = _gather_cat(h, w, kh, kw, stride, conv_pad)
        # torch (cout, cin, kh, kw) -> W_cat (cout, n_taps*cin_pad), taps at di*kw+dj
        wnp = np.asarray(wconv, np.float32)
        w_cat = np.zeros((cout, n_taps * cin_pad), np.float32)
        for di in range(kh):
            for dj in range(kw):
                t = di * kw + dj
                w_cat[:, t * cin_pad:t * cin_pad + cin] = wnp[:, :, di, dj]
        ops += [g_cat, jnp.asarray(w_cat), jnp.asarray(bconv).reshape(cout, 1)]
        flops += 2 * cin_pad * (h * w) * (n_taps * oh * ow)        # gather matmul
        flops += 2 * cout * (n_taps * cin_pad) * (oh * ow)         # W_cat matmul
        h, w = oh, ow

    c_last = params["convs"][-1][0].shape[0]
    assert params["linears"][0][0].shape[0] == h * w, "flatten dim must match h_dims[0]"
    for (wl, bl) in params["linears"]:
        ops += [wl, bl.reshape(1, -1)]                             # wl is (fin, fout) == torch W.T
        flops += 2 * c_last * wl.shape[0] * wl.shape[1]

    # Merged + lane-padded dueling head: col 0 = state value, cols 1..A = advantages.
    wv, bv = params["state"]
    wa, ba = params["adv"]
    hidden, n_actions = wa.shape
    hw_pad = np.zeros((hidden, _HEAD_PAD), np.float32)
    hb_pad = np.zeros((1, _HEAD_PAD), np.float32)
    hw_pad[:, 0:1] = np.asarray(wv, np.float32)
    hw_pad[:, 1:1 + n_actions] = np.asarray(wa, np.float32)
    hb_pad[0, 0] = float(np.asarray(bv)[0])
    hb_pad[0, 1:1 + n_actions] = np.asarray(ba, np.float32)
    ops += [jnp.asarray(hw_pad), jnp.asarray(hb_pad)]
    flops += 2 * c_last * hidden * _HEAD_PAD

    meta = dict(n_convs=len(params["convs"]), n_linears=len(params["linears"]),
                n_taps=n_taps_all, cin_pad=cin_pad_first, c_last=c_last,
                n_actions=n_actions, flops_per_state=int(flops))
    return ops, meta


# ---------------------------------------------------------------------------
# Forward builder
# ---------------------------------------------------------------------------
def build_forward(params, example_input_shape):
    _, H, W, _C = example_input_shape
    ops, meta = pack_params(params, (H, W))
    kernel = _make_fused_kernel(meta["n_convs"], meta["n_linears"], meta["n_taps"])
    cin_pad, c_last, n_actions = meta["cin_pad"], meta["c_last"], meta["n_actions"]
    const_bytes = int(sum(int(np.prod(a.shape)) * a.dtype.itemsize for a in ops))

    def _forward(x):
        # torch: x.squeeze_(0); x.transpose(-1,-3).transpose(-2,-1)  (B,H,W,C)->(B,C,H,W)
        squeeze_out = (x.shape[0] == 1)                   # static (mirrors squeeze_(0))
        B = x.shape[0]
        xc = jnp.transpose(x, (0, 3, 1, 2)).astype(jnp.float32)      # (B, C, H, W)
        x0 = xc.reshape(B, xc.shape[1], H * W)                       # (B, C, H*W)
        if cin_pad > x0.shape[1]:                                    # pad channels to a
            x0 = jnp.pad(x0, ((0, 0), (0, cin_pad - x0.shape[1]), (0, 0)))  # sublane tile

        args = (x0, *ops)
        in_specs = [pl.BlockSpec((1, cin_pad, H * W), lambda b: (b, 0, 0))]
        # Constants: full-array blocks with a constant index -> DMA'd once per grid.
        in_specs += [pl.BlockSpec(tuple(a.shape), lambda b, nd=a.ndim: (0,) * nd)
                     for a in ops]
        cost = pl.CostEstimate(
            flops=meta["flops_per_state"] * B, transcendentals=0,
            bytes_accessed=const_bytes + x0.size * 4 + B * c_last * _HEAD_PAD * 4)

        va = pl.pallas_call(
            kernel,
            grid=(B,),                                               # one state per step
            out_shape=jax.ShapeDtypeStruct((B, c_last, _HEAD_PAD), jnp.float32),
            in_specs=in_specs,
            out_specs=pl.BlockSpec((1, c_last, _HEAD_PAD), lambda b: (b, 0, 0)),
            compiler_params=pltpu.CompilerParams(
                dimension_semantics=("parallel",)),                  # 2 TCs on v7x
            cost_estimate=cost,
        )(*args)

        v = va[..., 0:1]                       # (B, C_last, 1)
        a = va[..., 1:1 + n_actions]           # (B, C_last, n_actions)
        # a.mean() is a scalar over ALL of `a` (incl. batch), exactly as in torch;
        # it couples every grid program, so this tiny combine lives in the wrapper.
        q = v + a - jnp.mean(a)
        if squeeze_out:
            q = q[0]
        return q

    return jax.jit(_forward)


# ---------------------------------------------------------------------------
# Pure-JAX reference (mirrors the PyTorch module) for correctness checking
# ---------------------------------------------------------------------------
def reference_forward(x, params):
    squeeze_out = (x.shape[0] == 1)                       # torch squeeze_(0) semantics
    act = jnp.transpose(x, (0, 3, 1, 2)).astype(jnp.float32)          # (B, C, H, W)
    for (w, b, stride) in params["convs"]:
        y = jax.lax.conv_general_dilated(
            act, w, window_strides=(stride, stride),
            padding=((1, 1), (1, 1)),
            dimension_numbers=("NCHW", "OIHW", "NCHW"))
        y = y + b[None, :, None, None]
        act = jnp.where(y >= 0, y, 0.01 * y)
    feat = act.reshape(act.shape[0], act.shape[1], -1)    # flatten(start_dim=-2)
    for (w, b) in params["linears"]:
        feat = feat @ w + b
    wv, bv = params["state"]
    wa, ba = params["adv"]
    v = feat @ wv + bv
    a = feat @ wa + ba
    q = v + a - jnp.mean(a)
    return q[0] if squeeze_out else q


# ---------------------------------------------------------------------------
# Deterministic parameter construction (shapes per Net.__init__, torch layouts)
# ---------------------------------------------------------------------------
def make_params(key, conv_c, strides, h_dims, n_actions):
    params = {"convs": [], "linears": []}
    for cin, cout, s in zip(conv_c[:-1], conv_c[1:], strides):
        key, k1, k2 = jax.random.split(key, 3)
        bound = 1.0 / float(np.sqrt(cin * 9.0))
        w = jax.random.uniform(k1, (cout, cin, 3, 3), jnp.float32, -bound, bound)
        b = jax.random.uniform(k2, (cout,), jnp.float32, -bound, bound)
        params["convs"].append((w, b, s))
    for fin, fout in zip(h_dims[:-1], h_dims[1:]):
        key, k1, k2 = jax.random.split(key, 3)
        bound = 1.0 / float(np.sqrt(fin))
        w = jax.random.uniform(k1, (fin, fout), jnp.float32, -bound, bound)  # torch W.T
        b = jax.random.uniform(k2, (fout,), jnp.float32, -bound, bound)
        params["linears"].append((w, b))
    key, k1, k2, k3, k4 = jax.random.split(key, 5)
    bound = 1.0 / float(np.sqrt(h_dims[-1]))
    params["state"] = (
        jax.random.uniform(k1, (h_dims[-1], 1), jnp.float32, -bound, bound),
        jax.random.uniform(k2, (1,), jnp.float32, -bound, bound),
    )
    params["adv"] = (
        jax.random.uniform(k3, (h_dims[-1], n_actions), jnp.float32, -bound, bound),
        jax.random.uniform(k4, (n_actions,), jnp.float32, -bound, bound),
    )
    return params


if __name__ == "__main__":
    # Config consistent with the module:
    #   conv_c=[4, 8, 16], strides=[2, 2]: 16x16 -> 8x8 -> 4x4 spatial
    #   flatten -> 16 features per channel, h_dims=[16, 32, 32], n_actions=6
    conv_c = [4, 8, 16]
    strides = [2, 2]
    h_dims = [16, 32, 32]
    n_actions = 6

    key = jax.random.PRNGKey(0)
    key, pkey, xkey = jax.random.split(key, 3)
    params = make_params(pkey, conv_c, strides, h_dims, n_actions)

    # Batch of 2 states (torch's squeeze_(0) is a no-op for a size-2 leading dim,
    # so the module computes a batched forward with a single global a.mean()).
    x = jax.random.normal(xkey, (2, 16, 16, conv_c[0]), jnp.float32)

    forward = build_forward(params, x.shape)
    q = jax.block_until_ready(forward(x))
    assert q.shape == (2, conv_c[-1], n_actions)
    assert bool(jnp.all(jnp.isfinite(q)))
    q_ref = jax.block_until_ready(reference_forward(x, params))
    np.testing.assert_allclose(np.asarray(q), np.asarray(q_ref), rtol=2e-2, atol=2e-2)

    # Canonical single-state input (leading size-1 dim is squeezed, as in Net.forward).
    x1 = x[:1]
    q1 = jax.block_until_ready(forward(x1))
    assert q1.shape == (conv_c[-1], n_actions)
    q1_ref = jax.block_until_ready(reference_forward(x1, params))
    np.testing.assert_allclose(np.asarray(q1), np.asarray(q1_ref), rtol=2e-2, atol=2e-2)

    print("KERNEL_OK")
</pallas_src>

<mosaic_0001>
module attributes {stable_mosaic.version = 11 : i64} {
  func.func @kernel(%arg0: i32, %arg1: memref<1x8x256xf32, #tpu.memory_space<vmem>>, %arg2: memref<256x576xbf16, #tpu.memory_space<vmem>>, %arg3: memref<8x72xf32, #tpu.memory_space<vmem>>, %arg4: memref<8x1xf32, #tpu.memory_space<vmem>>, %arg5: memref<64x144xbf16, #tpu.memory_space<vmem>>, %arg6: memref<16x72xf32, #tpu.memory_space<vmem>>, %arg7: memref<16x1xf32, #tpu.memory_space<vmem>>, %arg8: memref<16x32xf32, #tpu.memory_space<vmem>>, %arg9: memref<1x32xf32, #tpu.memory_space<vmem>>, %arg10: memref<32x32xf32, #tpu.memory_space<vmem>>, %arg11: memref<1x32xf32, #tpu.memory_space<vmem>>, %arg12: memref<32x128xf32, #tpu.memory_space<vmem>>, %arg13: memref<1x128xf32, #tpu.memory_space<vmem>>, %arg14: memref<1x16x128xf32, #tpu.memory_space<vmem>>) attributes {dimension_semantics = [#tpu.dimension_semantics<parallel>], iteration_bounds = array<i64: 2>, scalar_prefetch = 0 : i64, scratch_operands = 0 : i64, tpu.core_type = #tpu.core_type<tc>, window_params = [{transform_indices = @transform_0, window_bounds = array<i64: 1, 8, 256>}, {pipeline_mode = #tpu.pipeline_mode<synchronous>, transform_indices = @transform_1, window_bounds = array<i64: 256, 576>}, {pipeline_mode = #tpu.pipeline_mode<synchronous>, transform_indices = @transform_2, window_bounds = array<i64: 8, 72>}, {pipeline_mode = #tpu.pipeline_mode<synchronous>, transform_indices = @transform_3, window_bounds = array<i64: 8, 1>}, {pipeline_mode = #tpu.pipeline_mode<synchronous>, transform_indices = @transform_4, window_bounds = array<i64: 64, 144>}, {pipeline_mode = #tpu.pipeline_mode<synchronous>, transform_indices = @transform_5, window_bounds = array<i64: 16, 72>}, {pipeline_mode = #tpu.pipeline_mode<synchronous>, transform_indices = @transform_6, window_bounds = array<i64: 16, 1>}, {pipeline_mode = #tpu.pipeline_mode<synchronous>, transform_indices = @transform_7, window_bounds = array<i64: 16, 32>}, {pipeline_mode = #tpu.pipeline_mode<synchronous>, transform_indices = @transform_8, window_bounds = array<i64: 1, 32>}, {pipeline_mode = #tpu.pipeline_mode<synchronous>, transform_indices = @transform_9, window_bounds = array<i64: 32, 32>}, {pipeline_mode = #tpu.pipeline_mode<synchronous>, transform_indices = @transform_10, window_bounds = array<i64: 1, 32>}, {pipeline_mode = #tpu.pipeline_mode<synchronous>, transform_indices = @transform_11, window_bounds = array<i64: 32, 128>}, {pipeline_mode = #tpu.pipeline_mode<synchronous>, transform_indices = @transform_12, window_bounds = array<i64: 1, 128>}, {transform_indices = @transform_13, window_bounds = array<i64: 1, 16, 128>}]} {
    %c0 = arith.constant 0 : index
    %c0_0 = arith.constant 0 : index
    %c0_1 = arith.constant 0 : index
    %0 = vector.load %arg1[%c0, %c0_0, %c0_1] : memref<1x8x256xf32, #tpu.memory_space<vmem>>, vector<1x8x256xf32>
    %1 = vector.shape_cast %0 : vector<1x8x256xf32> to vector<8x256xf32>
    %2 = arith.truncf %1 : vector<8x256xf32> to vector<8x256xbf16>
    %c0_2 = arith.constant 0 : index
    %c0_3 = arith.constant 0 : index
    %3 = vector.load %arg2[%c0_2, %c0_3] : memref<256x576xbf16, #tpu.memory_space<vmem>>, vector<256x576xbf16>
    %cst = arith.constant dense<0.000000e+00> : vector<8x576xf32>
    %4 = tpu.matmul %2, %3, %cst {dimension_numbers = #tpu.dot_dimension_numbers<[1], [0], [0], [1], [0, 0, 1, 1], [], []>} : vector<8x256xbf16>, vector<256x576xbf16>, vector<8x576xf32> -> vector<8x576xf32>
    %5 = vector.extract_strided_slice %4 {offsets = [0, 0], sizes = [8, 64], strides = [1, 1]} : vector<8x576xf32> to vector<8x64xf32>
    %6 = vector.extract_strided_slice %4 {offsets = [0, 64], sizes = [8, 64], strides = [1, 1]} : vector<8x576xf32> to vector<8x64xf32>
    %7 = vector.extract_strided_slice %4 {offsets = [0, 128], sizes = [8, 64], strides = [1, 1]} : vector<8x576xf32> to vector<8x64xf32>
    %8 = vector.extract_strided_slice %4 {offsets = [0, 192], sizes = [8, 64], strides = [1, 1]} : vector<8x576xf32> to vector<8x64xf32>
    %9 = vector.extract_strided_slice %4 {offsets = [0, 256], sizes = [8, 64], strides = [1, 1]} : vector<8x576xf32> to vector<8x64xf32>
    %10 = vector.extract_strided_slice %4 {offsets = [0, 320], sizes = [8, 64], strides = [1, 1]} : vector<8x576xf32> to vector<8x64xf32>
    %11 = vector.extract_strided_slice %4 {offsets = [0, 384], sizes = [8, 64], strides = [1, 1]} : vector<8x576xf32> to vector<8x64xf32>
    %12 = vector.extract_strided_slice %4 {offsets = [0, 448], sizes = [8, 64], strides = [1, 1]} : vector<8x576xf32> to vector<8x64xf32>
    %13 = vector.extract_strided_slice %4 {offsets = [0, 512], sizes = [8, 64], strides = [1, 1]} : vector<8x576xf32> to vector<8x64xf32>
    %14 = tpu.concatenate %5, %6, %7, %8, %9, %10, %11, %12, %13 in 0 : vector<8x64xf32>, vector<8x64xf32>, vector<8x64xf32>, vector<8x64xf32>, vector<8x64xf32>, vector<8x64xf32>, vector<8x64xf32>, vector<8x64xf32>, vector<8x64xf32> -> vector<72x64xf32>
    %c0_4 = arith.constant 0 : index
    %c0_5 = arith.constant 0 : index
    %15 = vector.load %arg3[%c0_4, %c0_5] : memref<8x72xf32, #tpu.memory_space<vmem>>, vector<8x72xf32>
    %cst_6 = arith.constant dense<0.000000e+00> : vector<8x64xf32>
    %16 = tpu.matmul %15, %14, %cst_6 {dimension_numbers = #tpu.dot_dimension_numbers<[1], [0], [0], [1], [0, 0, 1, 1], [], []>} : vector<8x72xf32>, vector<72x64xf32>, vector<8x64xf32> -> vector<8x64xf32>
    %c0_7 = arith.constant 0 : index
    %c0_8 = arith.constant 0 : index
    %17 = vector.load %arg4[%c0_7, %c0_8] : memref<8x1xf32, #tpu.memory_space<vmem>>, vector<8x1xf32>
    %18 = vector.broadcast %17 : vector<8x1xf32> to vector<8x64xf32>
    %19 = arith.addf %16, %18 : vector<8x64xf32>
    %cst_9 = arith.constant 0.00999999977 : f32
    %20 = vector.broadcast %cst_9 : f32 to vector<8x64xf32>
    %21 = arith.mulf %20, %19 : vector<8x64xf32>
    %22 = arith.maximumf %19, %21 : vector<8x64xf32>
    %23 = arith.truncf %22 : vector<8x64xf32> to vector<8x64xbf16>
    %c0_10 = arith.constant 0 : index
    %c0_11 = arith.constant 0 : index
    %24 = vector.load %arg5[%c0_10, %c0_11] : memref<64x144xbf16, #tpu.memory_space<vmem>>, vector<64x144xbf16>
    %cst_12 = arith.constant dense<0.000000e+00> : vector<8x144xf32>
    %25 = tpu.matmul %23, %24, %cst_12 {dimension_numbers = #tpu.dot_dimension_numbers<[1], [0], [0], [1], [0, 0, 1, 1], [], []>} : vector<8x64xbf16>, vector<64x144xbf16>, vector<8x144xf32> -> vector<8x144xf32>
    %26 = vector.extract_strided_slice %25 {offsets = [0, 0], sizes = [8, 16], strides = [1, 1]} : vector<8x144xf32> to vector<8x16xf32>
    %27 = vector.extract_strided_slice %25 {offsets = [0, 16], sizes = [8, 16], strides = [1, 1]} : vector<8x144xf32> to vector<8x16xf32>
    %28 = vector.extract_strided_slice %25 {offsets = [0, 32], sizes = [8, 16], strides = [1, 1]} : vector<8x144xf32> to vector<8x16xf32>
    %29 = vector.extract_strided_slice %25 {offsets = [0, 48], sizes = [8, 16], strides = [1, 1]} : vector<8x144xf32> to vector<8x16xf32>
    %30 = vector.extract_strided_slice %25 {offsets = [0, 64], sizes = [8, 16], strides = [1, 1]} : vector<8x144xf32> to vector<8x16xf32>
    %31 = vector.extract_strided_slice %25 {offsets = [0, 80], sizes = [8, 16], strides = [1, 1]} : vector<8x144xf32> to vector<8x16xf32>
    %32 = vector.extract_strided_slice %25 {offsets = [0, 96], sizes = [8, 16], strides = [1, 1]} : vector<8x144xf32> to vector<8x16xf32>
    %33 = vector.extract_strided_slice %25 {offsets = [0, 112], sizes = [8, 16], strides = [1, 1]} : vector<8x144xf32> to vector<8x16xf32>
    %34 = vector.extract_strided_slice %25 {offsets = [0, 128], sizes = [8, 16], strides = [1, 1]} : vector<8x144xf32> to vector<8x16xf32>
    %35 = tpu.concatenate %26, %27, %28, %29, %30, %31, %32, %33, %34 in 0 : vector<8x16xf32>, vector<8x16xf32>, vector<8x16xf32>, vector<8x16xf32>, vector<8x16xf32>, vector<8x16xf32>, vector<8x16xf32>, vector<8x16xf32>, vector<8x16xf32> -> vector<72x16xf32>
    %c0_13 = arith.constant 0 : index
    %c0_14 = arith.constant 0 : index
    %36 = vector.load %arg6[%c0_13, %c0_14] : memref<16x72xf32, #tpu.memory_space<vmem>>, vector<16x72xf32>
    %cst_15 = arith.constant dense<0.000000e+00> : vector<16x16xf32>
    %37 = tpu.matmul %36, %35, %cst_15 {dimension_numbers = #tpu.dot_dimension_numbers<[1], [0], [0], [1], [0, 0, 1, 1], [], []>} : vector<16x72xf32>, vector<72x16xf32>, vector<16x16xf32> -> vector<16x16xf32>
    %c0_16 = arith.constant 0 : index
    %c0_17 = arith.constant 0 : index
    %38 = vector.load %arg7[%c0_16, %c0_17] : memref<16x1xf32, #tpu.memory_space<vmem>>, vector<16x1xf32>
    %39 = vector.broadcast %38 : vector<16x1xf32> to vector<16x16xf32>
    %40 = arith.addf %37, %39 : vector<16x16xf32>
    %cst_18 = arith.constant 0.00999999977 : f32
    %41 = vector.broadcast %cst_18 : f32 to vector<16x16xf32>
    %42 = arith.mulf %41, %40 : vector<16x16xf32>
    %43 = arith.maximumf %40, %42 : vector<16x16xf32>
    %c0_19 = arith.constant 0 : index
    %c0_20 = arith.constant 0 : index
    %44 = vector.load %arg8[%c0_19, %c0_20] : memref<16x32xf32, #tpu.memory_space<vmem>>, vector<16x32xf32>
    %cst_21 = arith.constant dense<0.000000e+00> : vector<16x32xf32>
    %45 = tpu.matmul %43, %44, %cst_21 {dimension_numbers = #tpu.dot_dimension_numbers<[1], [0], [0], [1], [0, 0, 1, 1], [], []>} : vector<16x16xf32>, vector<16x32xf32>, vector<16x32xf32> -> vector<16x32xf32>
    %c0_22 = arith.constant 0 : index
    %c0_23 = arith.constant 0 : index
    %46 = vector.load %arg9[%c0_22, %c0_23] : memref<1x32xf32, #tpu.memory_space<vmem>>, vector<1x32xf32>
    %47 = vector.broadcast %46 : vector<1x32xf32> to vector<16x32xf32>
    %48 = arith.addf %45, %47 : vector<16x32xf32>
    %c0_24 = arith.constant 0 : index
    %c0_25 = arith.constant 0 : index
    %49 = vector.load %arg10[%c0_24, %c0_25] : memref<32x32xf32, #tpu.memory_space<vmem>>, vector<32x32xf32>
    %cst_26 = arith.constant dense<0.000000e+00> : vector<16x32xf32>
    %50 = tpu.matmul %48, %49, %cst_26 {dimension_numbers = #tpu.dot_dimension_numbers<[1], [0], [0], [1], [0, 0, 1, 1], [], []>} : vector<16x32xf32>, vector<32x32xf32>, vector<16x32xf32> -> vector<16x32xf32>
    %c0_27 = arith.constant 0 : index
    %c0_28 = arith.constant 0 : index
    %51 = vector.load %arg11[%c0_27, %c0_28] : memref<1x32xf32, #tpu.memory_space<vmem>>, vector<1x32xf32>
    %52 = vector.broadcast %51 : vector<1x32xf32> to vector<16x32xf32>
    %53 = arith.addf %50, %52 : vector<16x32xf32>
    %c0_29 = arith.constant 0 : index
    %c0_30 = arith.constant 0 : index
    %54 = vector.load %arg12[%c0_29, %c0_30] : memref<32x128xf32, #tpu.memory_space<vmem>>, vector<32x128xf32>
    %cst_31 = arith.constant dense<0.000000e+00> : vector<16x128xf32>
    %55 = tpu.matmul %53, %54, %cst_31 {dimension_numbers = #tpu.dot_dimension_numbers<[1], [0], [0], [1], [0, 0, 1, 1], [], []>} : vector<16x32xf32>, vector<32x128xf32>, vector<16x128xf32> -> vector<16x128xf32>
    %c0_32 = arith.constant 0 : index
    %c0_33 = arith.constant 0 : index
    %56 = vector.load %arg13[%c0_32, %c0_33] : memref<1x128xf32, #tpu.memory_space<vmem>>, vector<1x128xf32>
    %57 = vector.broadcast %56 : vector<1x128xf32> to vector<16x128xf32>
    %58 = arith.addf %55, %57 : vector<16x128xf32>
    %c0_34 = arith.constant 0 : index
    %c0_35 = arith.constant 0 : index
    %c0_36 = arith.constant 0 : index
    %59 = vector.load %arg14[%c0_34, %c0_35, %c0_36] : memref<1x16x128xf32, #tpu.memory_space<vmem>>, vector<1x16x128xf32>
    %60 = vector.shape_cast %59 : vector<1x16x128xf32> to vector<16x128xf32>
    %61 = vector.shape_cast %58 : vector<16x128xf32> to vector<1x16x128xf32>
    tpu.vector_store %arg14[%c0_34, %c0_35, %c0_36], %61 {strides = array<i32>} : memref<1x16x128xf32, #tpu.memory_space<vmem>>, vector<1x16x128xf32>,
    return
  }
  func.func @transform_0(%arg0: i32) -> (i32, i32, i32) {
    %c0_i32 = arith.constant 0 : i32
    %c0_i32_0 = arith.constant 0 : i32
    %c0_i32_1 = arith.constant 0 : i32
    return %arg0, %c0_i32, %c0_i32_0 : i32, i32, i32
  }
  func.func @transform_1(%arg0: i32) -> (i32, i32) {
    %c0_i32 = arith.constant 0 : i32
    %c0_i32_0 = arith.constant 0 : i32
    %c0_i32_1 = arith.constant 0 : i32
    return %c0_i32, %c0_i32_0 : i32, i32
  }
  func.func @transform_2(%arg0: i32) -> (i32, i32) {
    %c0_i32 = arith.constant 0 : i32
    %c0_i32_0 = arith.constant 0 : i32
    %c0_i32_1 = arith.constant 0 : i32
    return %c0_i32, %c0_i32_0 : i32, i32
  }
  func.func @transform_3(%arg0: i32) -> (i32, i32) {
    %c0_i32 = arith.constant 0 : i32
    %c0_i32_0 = arith.constant 0 : i32
    %c0_i32_1 = arith.constant 0 : i32
    return %c0_i32, %c0_i32_0 : i32, i32
  }
  func.func @transform_4(%arg0: i32) -> (i32, i32) {
    %c0_i32 = arith.constant 0 : i32
    %c0_i32_0 = arith.constant 0 : i32
    %c0_i32_1 = arith.constant 0 : i32
    return %c0_i32, %c0_i32_0 : i32, i32
  }
  func.func @transform_5(%arg0: i32) -> (i32, i32) {
    %c0_i32 = arith.constant 0 : i32
    %c0_i32_0 = arith.constant 0 : i32
    %c0_i32_1 = arith.constant 0 : i32
    return %c0_i32, %c0_i32_0 : i32, i32
  }
  func.func @transform_6(%arg0: i32) -> (i32, i32) {
    %c0_i32 = arith.constant 0 : i32
    %c0_i32_0 = arith.constant 0 : i32
    %c0_i32_1 = arith.constant 0 : i32
    return %c0_i32, %c0_i32_0 : i32, i32
  }
  func.func @transform_7(%arg0: i32) -> (i32, i32) {
    %c0_i32 = arith.constant 0 : i32
    %c0_i32_0 = arith.constant 0 : i32
    %c0_i32_1 = arith.constant 0 : i32
    return %c0_i32, %c0_i32_0 : i32, i32
  }
  func.func @transform_8(%arg0: i32) -> (i32, i32) {
    %c0_i32 = arith.constant 0 : i32
    %c0_i32_0 = arith.constant 0 : i32
    %c0_i32_1 = arith.constant 0 : i32
    return %c0_i32, %c0_i32_0 : i32, i32
  }
  func.func @transform_9(%arg0: i32) -> (i32, i32) {
    %c0_i32 = arith.constant 0 : i32
    %c0_i32_0 = arith.constant 0 : i32
    %c0_i32_1 = arith.constant 0 : i32
    return %c0_i32, %c0_i32_0 : i32, i32
  }
  func.func @transform_10(%arg0: i32) -> (i32, i32) {
    %c0_i32 = arith.constant 0 : i32
    %c0_i32_0 = arith.constant 0 : i32
    %c0_i32_1 = arith.constant 0 : i32
    return %c0_i32, %c0_i32_0 : i32, i32
  }
  func.func @transform_11(%arg0: i32) -> (i32, i32) {
    %c0_i32 = arith.constant 0 : i32
    %c0_i32_0 = arith.constant 0 : i32
    %c0_i32_1 = arith.constant 0 : i32
    return %c0_i32, %c0_i32_0 : i32, i32
  }
  func.func @transform_12(%arg0: i32) -> (i32, i32) {
    %c0_i32 = arith.constant 0 : i32
    %c0_i32_0 = arith.constant 0 : i32
    %c0_i32_1 = arith.constant 0 : i32
    return %c0_i32, %c0_i32_0 : i32, i32
  }
  func.func @transform_13(%arg0: i32) -> (i32, i32, i32) {
    %c0_i32 = arith.constant 0 : i32
    %c0_i32_0 = arith.constant 0 : i32
    %c0_i32_1 = arith.constant 0 : i32
    return %arg0, %c0_i32, %c0_i32_0 : i32, i32, i32
  }
}

</mosaic_0001>

<bundles_post_ra>
// kernel: _forward.1
= control target key start
LH: loop header
LB: loop body
LE: loop exit
PB: predicated region body
PF: predicated region fallthrough
CT: control target
= control target key end

     0   :  { %s2253_s25 = smov 0   ;;  %s2618_s0 = inlined_call_operand.vmem [shape: f32[2,8,256], index: 0, kind: input, shape index: {}]   ;;  %s2619_s1 = inlined_call_operand.vmem [shape: bf16[256,576], index: 1, kind: input, shape index: {}]   ;;  %s2620_s2 = inlined_call_operand.vmem [shape: f32[8,72], index: 2, kind: input, shape index: {}]   ;;  %s2621_s3 = inlined_call_operand.vmem [shape: f32[8,1], index: 3, kind: input, shape index: {}]   ;;  %s2622_s4 = inlined_call_operand.vmem [shape: bf16[64,144], index: 4, kind: input, shape index: {}]   ;;  %s2623_s5 = inlined_call_operand.vmem [shape: f32[16,72], index: 5, kind: input, shape index: {}]   ;;  %s2624_s6 = inlined_call_operand.vmem [shape: f32[16,1], index: 6, kind: input, shape index: {}]   ;;  %s2625_s7 = inlined_call_operand.vmem [shape: f32[16,32], index: 7, kind: input, shape index: {}]   ;;  %s2626_s8 = inlined_call_operand.vmem [shape: f32[1,32], index: 8, kind: input, shape index: {}]   ;;  %s2627_s9 = inlined_call_operand.vmem [shape: f32[32,32], index: 9, kind: input, shape index: {}]   ;;  %s2628_s10 = inlined_call_operand.vmem [shape: f32[1,32], index: 10, kind: input, shape index: {}]   ;;  %s2629_s11 = inlined_call_operand.vmem [shape: f32[32,128], index: 11, kind: input, shape index: {}]   ;;  %s2630_s12 = inlined_call_operand.vmem [shape: f32[1,128], index: 12, kind: input, shape index: {}]   ;;  %s2631_s13 = inlined_call_operand.vmem [shape: f32[2,16,128], index: 13, kind: output, shape index: {}]  }
   0x1 LB: > { %s1727_s26 = sadd.s32 4294967295, %s2170_s25   ;;  %p1731_p0 = scmp.ge.s32.totalorder %s2170_s25, 1  ;;  %s2170_s25 = sphi %s2253_s25, %s23_s25  }
   0x2   : > { %p387_p1 = scmp.lt.s32.totalorder %s2170_s25, 3 }
   0x4   : > { %p388_p2 = pnand %p1731_p0, %p387_p1 }
   0x5   : > { %v2040_v0 = vld [vmem:[%s2619_s1 + $0x4] ss:$20 sps:$4 sm:$0xff] (!%p388_p2)   ;;  %v2042_v1 = vld [vmem:[%s2619_s1 + $0xc] ss:$20 sps:$4 sm:$0xff] (!%p388_p2)   ;;  %v2045_v3 = vld [vmem:[%s2619_s1 + $0x8] ss:$20 sps:$4 sm:$0xff] (!%p388_p2)  }
   0x6   : > { %391 = sbr.rel (%p388_p2) target bundleno = 1851 (0x73b), region = 72  ;;  %958 = vmatprep.subr.bf16.mxu0 (!%p388_p2), %v2040_v0  ;;  %v2044_v2 = vld [vmem:[%s2619_s1] ss:$20 sps:$4 sm:$0xff] (!%p388_p2)   ;;  %999 = vmatprep.subr.bf16.mxu1 (!%p388_p2), %v2042_v1  ;;  %v2050_v6 = vld [vmem:[%s2619_s1 + $0x28] ss:$20 sps:$4 sm:$0xff] (!%p388_p2)   ;;  %p431_p3 = scmp.lt.s32.totalorder (!%p388_p2), %s1727_s26, 1 }
   0x7   : > { %v2046_v4 = vld [vmem:[%s2619_s1 + $0x2c] ss:$20 sps:$4 sm:$0xff] (!%p388_p2)   ;;  %959 = vmatpush1.bf16.msra.mxu0 (!%p388_p2), %v2044_v2  ;;  %1000 = vmatpush1.bf16.msra.mxu1 (!%p388_p2), %v2045_v3  ;;  %v2048_v5 = vld [vmem:[%s2619_s1 + $0x34] ss:$20 sps:$4 sm:$0xff] (!%p388_p2)   ;;  %v2051_v7 = vld [vmem:[%s2619_s1 + $0x30] ss:$20 sps:$4 sm:$0xff] (!%p388_p2)  }
   0x8   : > { %960 = vmatprep.subr.bf16.mxu0 (!%p388_p2), %v2046_v4  ;;  %1001 = vmatprep.subr.bf16.mxu1 (!%p388_p2), %v2048_v5  ;;  %v2052_v8 = vld [vmem:[%s2619_s1 + $0x54] ss:$20 sps:$4 sm:$0xff] (!%p388_p2)   ;;  %v2054_v9 = vld [vmem:[%s2619_s1 + $0x5c] ss:$20 sps:$4 sm:$0xff] (!%p388_p2)   ;;  %v2057_v11 = vld [vmem:[%s2619_s1 + $0x58] ss:$20 sps:$4 sm:$0xff] (!%p388_p2)  }
   0x9   : > { %v2056_v10 = vld [vmem:[%s2619_s1 + $0x50] ss:$20 sps:$4 sm:$0xff] (!%p388_p2)   ;;  %v2062_v14 = vld [vmem:[%s2619_s1 + $0x78] ss:$20 sps:$4 sm:$0xff] (!%p388_p2)   ;;  %v2063_v15 = vld [vmem:[%s2619_s1 + $0x80] ss:$20 sps:$4 sm:$0xff] (!%p388_p2)  }
   0xa   : > { %v2058_v12 = vld [vmem:[%s2619_s1 + $0x7c] ss:$20 sps:$4 sm:$0xff] (!%p388_p2)   ;;  %v2060_v13 = vld [vmem:[%s2619_s1 + $0x84] ss:$20 sps:$4 sm:$0xff] (!%p388_p2)   ;;  %v2066_v17 = vld [vmem:[%s2619_s1 + $0xac] ss:$20 sps:$4 sm:$0xff] (!%p388_p2)  }
   0xb   : > { %961 = vmatpush1.bf16.msra.mxu0 (!%p388_p2), %v2050_v6  ;;  %1002 = vmatpush1.bf16.msra.mxu1 (!%p388_p2), %v2051_v7  ;;  %v2064_v16 = vld [vmem:[%s2619_s1 + $0xa4] ss:$20 sps:$4 sm:$0xff] (!%p388_p2)   ;;  %v2068_v18 = vld [vmem:[%s2619_s1 + $0xa0] ss:$20 sps:$4 sm:$0xff] (!%p388_p2)   ;;  %v2069_v19 = vld [vmem:[%s2619_s1 + $0xa8] ss:$20 sps:$4 sm:$0xff] (!%p388_p2)  }
   0xc   : > { %962 = vmatprep.subr.bf16.mxu0 (!%p388_p2), %v2052_v8  ;;  %1003 = vmatprep.subr.bf16.mxu1 (!%p388_p2), %v2054_v9  ;;  %v2070_v20 = vld [vmem:[%s2619_s1 + $0xcc] ss:$20 sps:$4 sm:$0xff] (!%p388_p2)   ;;  %v2072_v21 = vld [vmem:[%s2619_s1 + $0xd4] ss:$20 sps:$4 sm:$0xff] (!%p388_p2)   ;;  %v2075_v23 = vld [vmem:[%s2619_s1 + $0xd0] ss:$20 sps:$4 sm:$0xff] (!%p388_p2)  }
   0xd   : > { %v2074_v22 = vld [vmem:[%s2619_s1 + $0xc8] ss:$20 sps:$4 sm:$0xff]   ;;  %v2080_v26 = vld [vmem:[%s2619_s1 + $0xf0] ss:$20 sps:$4 sm:$0xff]   ;;  %v2081_v27 = vld [vmem:[%s2619_s1 + $0xf8] ss:$20 sps:$4 sm:$0xff]  }
   0xe   : > { %v2076_v24 = vld [vmem:[%s2619_s1 + $0xf4] ss:$20 sps:$4 sm:$0xff]   ;;  %v2078_v25 = vld [vmem:[%s2619_s1 + $0xfc] ss:$20 sps:$4 sm:$0xff]   ;;  %v2084_v29 = vld [vmem:[%s2619_s1 + $0x124] ss:$20 sps:$4 sm:$0xff]  }
   0xf   : > { %963 = vmatpush1.bf16.msra.mxu0 %v2056_v10  ;;  %1004 = vmatpush1.bf16.msra.mxu1 %v2057_v11  ;;  %v2082_v28 = vld [vmem:[%s2619_s1 + $0x11c] ss:$20 sps:$4 sm:$0xff]   ;;  %v2086_v30 = vld [vmem:[%s2619_s1 + $0x118] ss:$20 sps:$4 sm:$0xff]   ;;  %v2087_v31 = vld [vmem:[%s2619_s1 + $0x120] ss:$20 sps:$4 sm:$0xff]  }
  0x10   : > { %964 = vmatprep.subr.bf16.mxu0 %v2058_v12  ;;  %1005 = vmatprep.subr.bf16.mxu1 %v2060_v13  ;;  %v2088_v32 = vld [vmem:[%s2619_s1 + $0x144] ss:$20 sps:$4 sm:$0xff]   ;;  %v2090_v33 = vld [vmem:[%s2619_s1 + $0x14c] ss:$20 sps:$4 sm:$0xff]   ;;  %v2093_v35 = vld [vmem:[%s2619_s1 + $0x148] ss:$20 sps:$4 sm:$0xff]  }
  0x11   : > { %v2092_v34 = vld [vmem:[%s2619_s1 + $0x140] ss:$20 sps:$4 sm:$0xff]   ;;  %s2633_s26 = smov (!%p431_p3, %s1727_s26), 1  ;;  %v2098_v38 = vld [vmem:[%s2619_s1 + $0x168] ss:$20 sps:$4 sm:$0xff]   ;;  %s2173_s18 = smov 64  }
  0x12   : > { %v2094_v36 = vld [vmem:[%s2619_s1 + $0x16c] ss:$20 sps:$4 sm:$0xff]   ;;  %v2096_v37 = vld [vmem:[%s2619_s1 + $0x174] ss:$20 sps:$4 sm:$0xff]   ;;  %v2099_v39 = vld [vmem:[%s2619_s1 + $0x170] ss:$20 sps:$4 sm:$0xff]  }
  0x13   : > { %965 = vmatpush1.bf16.msra.mxu0 %v2062_v14  ;;  %1006 = vmatpush1.bf16.msra.mxu1 %v2063_v15  ;;  %v2100_v40 = vld [vmem:[%s2619_s1 + $0x194] ss:$20 sps:$4 sm:$0xff]   ;;  %s1839_s17 = sshll.u32 %s2633_s26, 4  ;;  %v2102_v41 = vld [vmem:[%s2619_s1 + $0x19c] ss:$20 sps:$4 sm:$0xff]   ;;  %vm2174_vm0 = vmmov 0  }
  0x14   : > { %966 = vmatprep.subr.bf16.mxu0 %v2064_v16  ;;  %1007 = vmatprep.subr.bf16.mxu1 %v2066_v17  ;;  %v2104_v42 = vld [vmem:[%s2619_s1 + $0x190] ss:$20 sps:$4 sm:$0xff]   ;;  %v2105_v43 = vld [vmem:[%s2619_s1 + $0x198] ss:$20 sps:$4 sm:$0xff]   ;;  %s2405_s28 = scalar_lea.vmem %s2618_s0, %s1839_s17  ;;  %v2111_v48 = vld [vmem:[%s2619_s1 + $0x1c0] ss:$20 sps:$4 sm:$0xff]  }
  0x15   : > { %v2106_v44 = vld [vmem:[%s2619_s1 + $0x1bc] ss:$20 sps:$4 sm:$0xff]   ;;  %v2108_v45 = vld [vmem:[%s2619_s1 + $0x1c4] ss:$20 sps:$4 sm:$0xff]   ;;  %v443_v47 = vld [vmem:[%s2405_s28 + $0x8] sm:$0xff]  ;;  %vm1103_vm1 = vcmask 588800  }
  0x16   : > { %v2110_v46 = vld [vmem:[%s2619_s1 + $0x1b8] ss:$20 sps:$4 sm:$0xff]   ;;  %v445_v49 = vpack.c.bf16 %v443_v47, %v443_v47  ;;  %v2116_v52 = vld [vmem:[%s2619_s1 + $0x1e0] ss:$20 sps:$4 sm:$0xff]   ;;  %v2117_v53 = vld [vmem:[%s2619_s1 + $0x1e8] ss:$20 sps:$4 sm:$0xff]  }
  0x17   : > { %967 = vmatpush1.bf16.msra.mxu0 %v2068_v18  ;;  %1008 = vmatpush1.bf16.msra.mxu1 %v2069_v19  ;;  %v2112_v50 = vld [vmem:[%s2619_s1 + $0x1e4] ss:$20 sps:$4 sm:$0xff]   ;;  %v2114_v51 = vld [vmem:[%s2619_s1 + $0x1ec] ss:$20 sps:$4 sm:$0xff]   ;;  %v2120_v55 = vld [vmem:[%s2619_s1 + $0x214] ss:$20 sps:$4 sm:$0xff]  }
  0x18   : > { %968 = vmatprep.subr.bf16.mxu0 %v2070_v20  ;;  %1009 = vmatprep.subr.bf16.mxu1 %v2072_v21  ;;  %v2118_v54 = vld [vmem:[%s2619_s1 + $0x20c] ss:$20 sps:$4 sm:$0xff]   ;;  %v2122_v56 = vld [vmem:[%s2619_s1 + $0x208] ss:$20 sps:$4 sm:$0xff]   ;;  %v2123_v57 = vld [vmem:[%s2619_s1 + $0x210] ss:$20 sps:$4 sm:$0xff]  }
  0x19   : > { %990 = vmatprep.mubr.bf16.mxu0 %v445_v49  ;;  %1031 = vmatprep.mubr.bf16.mxu1 %v445_v49  ;;  %v2124_v58 = vld [vmem:[%s2619_s1 + $0x234] ss:$20 sps:$4 sm:$0xff]   ;;  %v2126_v59 = vld [vmem:[%s2619_s1 + $0x23c] ss:$20 sps:$4 sm:$0xff]   ;;  %v2129_v61 = vld [vmem:[%s2619_s1 + $0x238] ss:$20 sps:$4 sm:$0xff]  }
  0x1a   : > { %v2128_v60 = vld [vmem:[%s2619_s1 + $0x230] ss:$20 sps:$4 sm:$0xff]   ;;  %v2134_v0 = vld [vmem:[%s2619_s1 + $0x258] ss:$20 sps:$4 sm:$0xff]   ;;  %v2135_v1 = vld [vmem:[%s2619_s1 + $0x260] ss:$20 sps:$4 sm:$0xff]  }
  0x1b   : > { %969 = vmatpush1.bf16.msra.mxu0 %v2074_v22  ;;  %1010 = vmatpush1.bf16.msra.mxu1 %v2075_v23  ;;  %v2130_v62 = vld [vmem:[%s2619_s1 + $0x25c] ss:$20 sps:$4 sm:$0xff]   ;;  %v2132_v63 = vld [vmem:[%s2619_s1 + $0x264] ss:$20 sps:$4 sm:$0xff]   ;;  %v2140_v8 = vld [vmem:[%s2619_s1 + $0x1a0] ss:$20 sps:$4 sm:$0xff]  }
  0x1c   : > { %970 = vmatprep.subr.bf16.mxu0 %v2076_v24  ;;  %1011 = vmatprep.subr.bf16.mxu1 %v2078_v25  ;;  %v442_v2 = vld [vmem:[%s2405_s28] sm:$0xff]  ;;  %v2138_v6 = vld [vmem:[%s2619_s1 + $0x178] ss:$20 sps:$4 sm:$0xff]   ;;  %v2142_v10 = vld [vmem:[%s2619_s1 + $0x1c8] ss:$20 sps:$4 sm:$0xff]   ;;  %v2172_v20 = vmov 0.0|0.0  }
  0x1d   : > { %v2136_v3 = vld [vmem:[%s2619_s1 + $0x150] ss:$20 sps:$4 sm:$0xff]   ;;  %v444_v4 = vpack.c.bf16 %v442_v2, %v442_v2  ;;  %v2139_v7 = vld [vmem:[%s2619_s1 + $0x38] ss:$20 sps:$4 sm:$0xff]   ;;  %v2141_v9 = vld [vmem:[%s2619_s1 + $0x60] ss:$20 sps:$4 sm:$0xff]  }
  0x1e   : > { %v2137_v5 = vld [vmem:[%s2619_s1 + $0x10] ss:$20 sps:$4 sm:$0xff]   ;;  %v2143_v11 = vld [vmem:[%s2619_s1 + $0x88] ss:$20 sps:$4 sm:$0xff]   ;;  %v2146_v14 = vld [vmem:[%s2619_s1 + $0x218] ss:$20 sps:$4 sm:$0xff]  }
  0x1f   : > { %971 = vmatpush1.bf16.msra.mxu0 %v2080_v26  ;;  %1012 = vmatpush1.bf16.msra.mxu1 %v2081_v27  ;;  %v2144_v12 = vld [vmem:[%s2619_s1 + $0x1f0] ss:$20 sps:$4 sm:$0xff]   ;;  %v2147_v15 = vld [vmem:[%s2619_s1 + $0xd8] ss:$20 sps:$4 sm:$0xff]   ;;  %v2148_v16 = vld [vmem:[%s2619_s1 + $0x240] ss:$20 sps:$4 sm:$0xff]  }
  0x20   : > { %972 = vmatprep.subr.bf16.mxu0 %v2082_v28  ;;  %1013 = vmatprep.subr.bf16.mxu1 %v2084_v29  ;;  %v2145_v13 = vld [vmem:[%s2619_s1 + $0xb0] ss:$20 sps:$4 sm:$0xff]   ;;  %v2149_v17 = vld [vmem:[%s2619_s1 + $0x100] ss:$20 sps:$4 sm:$0xff]   ;;  %v2150_v18 = vld [vmem:[%s2619_s1 + $0x268] ss:$20 sps:$4 sm:$0xff]  }
  0x21   : > { %v2151_v19 = vld [vmem:[%s2619_s1 + $0x128] ss:$20 sps:$4 sm:$0xff]   ;;  %v2175_v29 = vmov 0.0   ;;  %vm1228_vm2 = vcmask 523264   ;;  %s2177_s27 = smov 80   ;;  %s2178_s29 = smov 112  }
  0x22   : > { %v2152_v47 = vld [vmem:[%s2622_s4] ss:$8 sps:$4 sm:$0xff]   ;;  %s2179_s30 = smov 48   ;;  %s2180_s14 = smov 96   ;;  %vm1403_vm3 = vcmask 130048   ;;  %vm1496_vm4 = vcmask 261120  }
  0x23   : > { %973 = vmatpush1.bf16.msra.mxu0 %v2086_v30  ;;  %1014 = vmatpush1.bf16.msra.mxu1 %v2087_v31  ;;  %v1097_v30 = vld [vmem:[%s2621_s3] sm:$0xff]  ;;  %v2176_v31 = vmov 0   ;;  %s2181_s19 = smov 16   ;;  %v1298_v2 = vld [vmem:[%s2624_s6 + $0x8] sm:$0xff]  ;;  %s2182_s21 = smov 32  }
  0x24   : > { %974 = vmatprep.subr.bf16.mxu0 %v2088_v32  ;;  %1015 = vmatprep.subr.bf16.mxu1 %v2090_v33 }
  0x25   : > { %2038 = vset.pattern.permute.xlu0 %v2176_v31  ;;  %2039 = vset.pattern.permute.xlu1 %v2176_v31 }
  0x27   : > { %975 = vmatpush1.bf16.msra.mxu0 %v2092_v34  ;;  %1016 = vmatpush1.bf16.msra.mxu1 %v2093_v35 }
  0x28   : > { %976 = vmatprep.subr.bf16.mxu0 %v2094_v36  ;;  %1017 = vmatprep.subr.bf16.mxu1 %v2096_v37 }
  0x2b   : > { %977 = vmatpush1.bf16.msra.mxu0 %v2098_v38  ;;  %1018 = vmatpush1.bf16.msra.mxu1 %v2099_v39 }
  0x2c   : > { %978 = vmatprep.subr.bf16.mxu0 %v2100_v40  ;;  %1019 = vmatprep.subr.bf16.mxu1 %v2102_v41 }
  0x2f   : > { %979 = vmatpush1.bf16.msra.mxu0 %v2104_v42  ;;  %1020 = vmatpush1.bf16.msra.mxu1 %v2105_v43 }
  0x30   : > { %980 = vmatprep.subr.bf16.mxu0 %v2106_v44  ;;  %1021 = vmatprep.subr.bf16.mxu1 %v2108_v45  ;;  %v2154_v45 = vld [vmem:[%s2622_s4 + $0x4] ss:$8 sps:$4 sm:$0xff]  }
  0x33   : > { %981 = vmatpush1.bf16.msra.mxu0 %v2110_v46  ;;  %1022 = vmatpush1.bf16.msra.mxu1 %v2111_v48  ;;  %v1096_v46 = vld [vmem:[%s2620_s2] sm:$0xff]  ;;  %v2157_v48 = vld [vmem:[%s2622_s4 + $0x14] ss:$8 sps:$4 sm:$0xff]  }
  0x34   : > { %982 = vmatprep.subr.bf16.mxu0 %v2112_v50  ;;  %1023 = vmatprep.subr.bf16.mxu1 %v2114_v51  ;;  %v2160_v50 = vld [vmem:[%s2622_s4 + $0x24] ss:$8 sps:$4 sm:$0xff]   ;;  %v2158_v51 = vld [vmem:[%s2622_s4 + $0x20] ss:$8 sps:$4 sm:$0xff]  }
  0x37   : > { %983 = vmatpush1.bf16.msra.mxu0 %v2116_v52  ;;  %1024 = vmatpush1.bf16.msra.mxu1 %v2117_v53  ;;  %v2163_v52 = vld [vmem:[%s2622_s4 + $0x34] ss:$8 sps:$4 sm:$0xff]   ;;  %v2161_v53 = vld [vmem:[%s2622_s4 + $0x30] ss:$8 sps:$4 sm:$0xff]  }
  0x38   : > { %984 = vmatprep.subr.bf16.mxu0 %v2118_v54  ;;  %1025 = vmatprep.subr.bf16.mxu1 %v2120_v55 }
  0x3b   : > { %985 = vmatpush1.bf16.msra.mxu0 %v2122_v56  ;;  %1026 = vmatpush1.bf16.msra.mxu1 %v2123_v57 }
  0x3c   : > { %986 = vmatprep.subr.bf16.mxu0 %v2124_v58  ;;  %1027 = vmatprep.subr.bf16.mxu1 %v2126_v59 }
  0x3f   : > { %987 = vmatpush1.bf16.msra.mxu0 %v2128_v60  ;;  %1028 = vmatpush1.bf16.msra.mxu1 %v2129_v61 }
  0x40   : > { %988 = vmatprep.subr.bf16.mxu0 %v2130_v62  ;;  %1029 = vmatprep.subr.bf16.mxu1 %v2132_v63 }
  0x43   : > { %989 = vmatpush1.bf16.msra.mxu0 %v2134_v0  ;;  %1030 = vmatpush1.bf16.msra.mxu1 %v2135_v1  ;;  %v1295_v1 = vld [vmem:[%s2623_s5] sm:$0xff] }
  0x44   : > { %1841 = vmatprep.subr.bf16.mxu0 %v2136_v3  ;;  %1971 = vmatprep.subr.bf16.mxu1 %v2172_v20  ;;  %v1297_v3 = vld [vmem:[%s2624_s6] sm:$0xff] }
  0x46   : > { %991 = vmatmul.mubr.bf16.vlgmr.msra.gmra.mrb[0].mxu0 %v444_v4  ;;  %1032 = vmatmul.mubr.bf16.vlgmr.msra.gmra.mrb[0].mxu1 %v444_v4 }
  0x47   : > { %1842 = vmatpush3.bf16.msra.mxu0 %v2137_v5  ;;  %1072 = vmatprep.mubr.bf16.mxu0 %v445_v49  ;;  %v2155_v49 = vld [vmem:[%s2622_s4 + $0x10] ss:$8 sps:$4 sm:$0xff]  }
  0x48   : > { %1843 = vmatprep.subr.bf16.mxu0 %v2138_v6  ;;  %1918 = vmatprep.mubr.msk.f32.mxu1 %vm2174_vm0, %v2175_v29 }
  0x4b   : > { %1844 = vmatpush3.bf16.msra.mxu0 %v2139_v7 }
  0x4c   : > { %1845 = vmatprep.subr.bf16.mxu0 %v2140_v8 }
  0x4f   : > { %1846 = vmatpush3.bf16.msra.mxu0 %v2141_v9 }
  0x50   : > { %1847 = vmatprep.subr.bf16.mxu0 %v2142_v10 }
  0x53   : > { %1848 = vmatpush3.bf16.msra.mxu0 %v2143_v11 }
  0x54   : > { %1849 = vmatprep.subr.bf16.mxu0 %v2144_v12 }
  0x57   : > { %1850 = vmatpush3.bf16.msra.mxu0 %v2145_v13 }
  0x58   : > { %1851 = vmatprep.subr.bf16.mxu0 %v2146_v14 }
  0x5b   : > { %1852 = vmatpush3.bf16.msra.mxu0 %v2147_v15  ;;  %v1296_v15 = vld [vmem:[%s2623_s5 + $0x8] sm:$0xff] }
  0x5c   : > { %1853 = vmatprep.subr.bf16.mxu0 %v2148_v16  ;;  %v1394_v16 = vld [vmem:[%s2625_s7] sm:$0xff] }
  0x5f   : > { %1854 = vmatpush3.bf16.msra.mxu0 %v2149_v17  ;;  %v1395_v17 = vld [vmem:[%s2625_s7 + $0x8] sm:$0xff] }
  0x60   : > { %1855 = vmatprep.subr.bf16.mxu0 %v2150_v18  ;;  %v1999_v18 = vpack.c.bf16 %v1395_v17, %v1394_v16 }
  0x63   : > { %1856 = vmatpush3.bf16.msra.mxu0 %v2151_v19  ;;  %v1485_v19 = vld [vmem:[%s2627_s9] sm:$0xff] }
  0x66   : > { %1073 = vmatmul.mubr.bf16.vlgmr.msra.gmra.mrb[4].mxu0 %v444_v4 }
  0x67   : > { %1939 = vmatprep.mubr.msk.f32.mxu0 %vm1103_vm1, %v1295_v1 }
 0x119   : > { %v992_v21 = vpop.f32.mrb[0].mxu0  ;;  %v1033_v22 = vpop.f32.mrb[0].mxu1 }
 0x11a   : > { %1089 = vrot.lane.b32.xlu1 %v1033_v22, %s2173_s18  ;;  %1081 = vrot.lane.b32.xlu0 %v992_v21, %s2173_s18  ;;  %v994_v23 = vpop.f32.mrb[1].mxu0  ;;  %v1035_v24 = vpop.f32.mrb[1].mxu1 }
 0x11b   : > { %v996_v25 = vpop.f32.mrb[2].mxu0  ;;  %v1037_v26 = vpop.f32.mrb[2].mxu1 }
 0x11c   : > { %v997_v27 = vpop.f32.mrb[3].mxu0  ;;  %v1038_v28 = vpop.f32.mrb[3].mxu1 }
 0x11e   : > { %1093 = vrot.lane.b32.xlu1 %v1035_v24, %s2173_s18  ;;  %1085 = vrot.lane.b32.xlu0 %v994_v23, %s2173_s18 }
 0x122   : > { %1100 = vperm.xlu0 %2038, %v1097_v30  }
 0x139   : > { %v1857_v32 = vpop.f32.mrb[4].mxu0 }
 0x13a   : > { %v1858_v33 = vpop.f32.mrb[5].mxu0 }
 0x13b   : > { %v1859_v34 = vadd.f32 %v1858_v33, %v1857_v32  ;;  %v1860_v35 = vpop.f32.mrb[6].mxu0  ;;  %v1487_v32 = vld [vmem:[%s2627_s9 + $0x10] sm:$0xff]  ;;  %v1488_v33 = vld [vmem:[%s2627_s9 + $0x18] sm:$0xff] }
 0x13c   : > { %v1861_v36 = vpop.f32.mrb[7].mxu0  ;;  %v1578_v35 = vld [vmem:[%s2629_s11] sm:$0xff] }
 0x13d   : > { %v1579_v36 = vld [vmem:[%s2629_s11 + $0x8] sm:$0xff] }
 0x18c   : > { %v1082_v37 = vpop.permute.xlu0 %1081  ;;  %v1090_v39 = vpop.permute.xlu1 %1089 }
 0x18d   : > { %v1972_v38 = vpack.c.bf16 %v1082_v37, %v992_v21  ;;  %v1978_v42 = vpack.c.bf16 %v1090_v39, %v1033_v22  ;;  %v2011_v37 = vpack.c.bf16 %v1579_v36, %v1578_v35 }
 0x18f   : > { %1973 = vmatpush3.bf16.msra.mxu1 %v1972_v38  ;;  %v1828_v38 = vld [vmem:[%s2626_s8] ss:$0 sm:$0xff] }
 0x190   : > { %v1086_v40 = vpop.permute.xlu0 %1085  ;;  %1974 = vmatprep.subr.bf16.mxu1 %v2172_v20  ;;  %v1094_v43 = vpop.permute.xlu1 %1093 }
 0x191   : > { %v1975_v41 = vpack.c.bf16 %v1086_v40, %v994_v23  ;;  %v1981_v44 = vpack.c.bf16 %v1094_v43, %v1035_v24  ;;  %v1580_v43 = vld [vmem:[%s2629_s11 + $0x10] sm:$0xff] }
 0x193   : > { %1976 = vmatpush3.bf16.msra.mxu1 %v1975_v41 }
 0x194   : > { %1977 = vmatprep.subr.bf16.mxu1 %v2172_v20 }
 0x197   : > { %1979 = vmatpush3.bf16.msra.mxu1 %v1978_v42 }
 0x198   : > { %1980 = vmatprep.subr.bf16.mxu1 %v2172_v20  ;;  %v1486_v20 = vld [vmem:[%s2627_s9 + $0x8] sm:$0xff] }
 0x199   : > { %v2003_v21 = vpack.c.bf16 %v1486_v20, %v1485_v19 }
 0x19b   : > { %1982 = vmatpush3.bf16.msra.mxu1 %v1981_v44  ;;  %v1581_v44 = vld [vmem:[%s2629_s11 + $0x18] sm:$0xff] }
 0x19c   : > { %1916 = vmatprep.subr.mxu1 %v2175_v29 }
 0x19f   : > { %1917 = vmatpush3.msra.mxu1 %v1859_v34  ;;  %v2007_v34 = vpack.c.bf16 %v1488_v33, %v1487_v32 }
 0x1a0   : > { %1919 = vmatmul.mubr.msk.f32.vlgmr.msra.gmra.mrb[4].mxu1 %vm1103_vm1, %v1096_v46  ;;  %1232 = vmatprep.subr.bf16.mxu1 %v2154_v45  ;;  %v2015_v45 = vpack.c.bf16 %v1581_v44, %v1580_v43  ;;  %v1831_v46 = vld [vmem:[%s2628_s10] ss:$0 sm:$0xff] }
 0x1a1   : > { %1233 = vmatpush1.bf16.msra.mxu1 %v2152_v47  ;;  %1264 = vmatprep.mubr.bf16.mxu1 %v2176_v31  ;;  %v1101_v54 = vpop.permute.xlu0 %1100 }
 0x1a2   : > { %1234 = vmatprep.subr.bf16.mxu1 %v2157_v48 }
 0x1a5   : > { %1235 = vmatpush1.bf16.msra.mxu1 %v2155_v49 }
 0x1a6   : > { %1236 = vmatprep.subr.bf16.mxu1 %v2160_v50 }
 0x1a9   : > { %1237 = vmatpush1.bf16.msra.mxu1 %v2158_v51  ;;  %v1834_v51 = vld [vmem:[%s2630_s12] ss:$0 sm:$0xff] }
 0x1aa   : > { %1238 = vmatprep.subr.bf16.mxu1 %v2163_v52 }
 0x1ad   : > { %1239 = vmatpush1.bf16.msra.mxu1 %v2161_v53 }
 0x1ae   : > { %2000 = vmatprep.subr.bf16.mxu1 %v1999_v18 }
 0x273   : > { %v1173_v55 = vpop.f32.mrb[4].mxu1 }
 0x274   : > { %v1174_v56 = vadd.f32 %v1173_v55, %v1101_v54  ;;  %v1920_v57 = vpop.f32.mrb[5].mxu1 }
 0x276   : > { %v1177_v58 = vmul.f32 0.01, %v1174_v56 }
 0x278   : > { %v1178_v59 = vmax.f32 %v1174_v56, %v1177_v58 }
 0x27a   : > { %v1179_v60 = vpack.c.bf16 %v1178_v59, %v1178_v59 }
 0x27c   : > { %1825 = vmatmul.mubr.msk.bf16.vlgmr.msra.gmra.mrb[8].mxu1 %vm1228_vm2, %v1179_v60 }
 0x27d   : > { %2002 = vmatpush3.bf16.msra.mxu1 %v1999_v18 }
 0x27e   : > { %2004 = vmatprep.subr.bf16.mxu1 %v2003_v21 }
 0x34f   : > { %v1266_v61 = vpop.f32.mrb[8].mxu1 }
 0x350   : > { %1280 = vrot.lane.b32.xlu0 %v1266_v61, %s2177_s27  ;;  %1274 = vrot.lane.b32.xlu1 %v1266_v61, %s2178_s29  ;;  %v1268_v62 = vpop.f32.mrb[9].mxu1  ;;  %s440_s27 = scalar_lea.vmem %s2631_s13, %s1839_s17 }
 0x351   : > { %v1270_v63 = vpop.f32.mrb[10].mxu1 }
 0x352   : > { %v1271_v0 = vpop.f32.mrb[11].mxu1 }
 0x354   : > { %1286 = vrot.lane.b32.xlu0 %v1266_v61, %s2179_s30  ;;  %1277 = vrot.lane.b32.xlu1 %v1266_v61, %s2180_s14 }
 0x358   : > { %1292 = vrot.lane.b32.xlu0 %v1266_v61, %s2181_s19  ;;  %1283 = vrot.lane.b32.xlu1 %v1266_v61, %s2173_s18 }
 0x35c   : > { %1306 = vperm.xlu0 %2038, %v1298_v2   ;;  %1289 = vrot.lane.b32.xlu1 %v1266_v61, %s2182_s21 }
 0x360   : > { %1301 = vperm.xlu1 %2039, %v1297_v3  }
 0x3c2   : > { %v1281_v4 = vpop.permute.xlu0 %1280  ;;  %v1275_v5 = vpop.permute.xlu1 %1274 }
 0x3c3   : > { %v1983_v6 = vpack.c.bf16 %v1275_v5, %v1266_v61 }
 0x3c5   : > { %1984 = vmatprep.subr.bf16.mxu0 %v1983_v6 }
 0x3c6   : > { %1986 = vmatpush3.bf16.msra.mxu0 %v1983_v6  ;;  %v1278_v7 = vpop.permute.xlu1 %1277  ;;  %v1287_v9 = vpop.permute.xlu0 %1286 }
 0x3c7   : > { %v1987_v8 = vpack.c.bf16 %v1281_v4, %v1278_v7 }
 0x3c9   : > { %1988 = vmatprep.subr.bf16.mxu0 %v1987_v8 }
 0x3ca   : > { %1990 = vmatpush3.bf16.msra.mxu0 %v1987_v8  ;;  %v1284_v10 = vpop.permute.xlu1 %1283  ;;  %v1293_v12 = vpop.permute.xlu0 %1292 }
 0x3cb   : > { %v1991_v11 = vpack.c.bf16 %v1287_v9, %v1284_v10 }
 0x3cd   : > { %1992 = vmatprep.subr.bf16.mxu0 %v1991_v11 }
 0x3ce   : > { %1994 = vmatpush3.bf16.msra.mxu0 %v1991_v11  ;;  %v1290_v13 = vpop.permute.xlu1 %1289 }
 0x3cf   : > { %v1995_v14 = vpack.c.bf16 %v1293_v12, %v1290_v13 }
 0x3d1   : > { %1996 = vmatprep.subr.bf16.mxu0 %v1995_v14 }
 0x3d2   : > { %1998 = vmatpush3.bf16.msra.mxu0 %v1995_v14 }
 0x3d3   : > { %1937 = vmatprep.subr.mxu0 %v1268_v62 }
 0x3d6   : > { %1938 = vmatpush3.msra.mxu0 %v1268_v62 }
 0x3d7   : > { %1940 = vmatmul.mubr.msk.f32.vlgmr.msra.gmra.mrb[8].mxu0 %vm1103_vm1, %v1296_v15  ;;  %2012 = vmatprep.subr.bf16.mxu0 %v2011_v37 }
 0x3d8   : > { %2014 = vmatpush3.bf16.msra.mxu0 %v2011_v37 }
 0x3d9   : > { %2016 = vmatprep.subr.bf16.mxu0 %v2015_v45 }
 0x3db   : > { %v1307_v23 = vpop.permute.xlu0 %1306 }
 0x3dc   : > { %2018 = vmatpush3.bf16.msra.mxu0 %v2015_v45 }
 0x3df   : > { %v1302_v22 = vpop.permute.xlu1 %1301 }
 0x4aa   : > { %v1941_v24 = vpop.f32.mrb[8].mxu0 }
 0x4ab   : > { %v1387_v25 = vadd.f32 %v1941_v24, %v1307_v23  ;;  %v1381_v26 = vpop.f32.mrb[9].mxu0 }
 0x4ac   : > { %v1382_v27 = vadd.f32 %v1381_v26, %v1302_v22 }
 0x4ad   : > { %v1391_v28 = vmul.f32 0.01, %v1387_v25 }
 0x4ae   : > { %v1390_v29 = vmul.f32 0.01, %v1382_v27 }
 0x4af   : > { %v1393_v31 = vmax.f32 %v1387_v25, %v1391_v28 }
 0x4b0   : > { %v1392_v30 = vmax.f32 %v1382_v27, %v1390_v29 }
 0x4b2   : > { %1946 = vmatprep.mubr.msk.f32.mxu1 %vm1403_vm3, %v1392_v30 }
 0x4b3   : > { %1947 = vmatmul.mubr.msk.f32.vlgmr.msra.gmra.mrb[6].mxu1 %vm1403_vm3, %v1393_v31 }
 0x4b4   : > { %2006 = vmatpush3.bf16.msra.mxu1 %v2003_v21 }
 0x4b5   : > { %2008 = vmatprep.subr.bf16.mxu1 %v2007_v34 }
 0x4b8   : > { %2010 = vmatpush3.bf16.msra.mxu1 %v2007_v34 }
 0x586   : > { %v1948_v39 = vpop.f32.mrb[6].mxu1 }
 0x587   : > { %v1476_v40 = vpop.f32.mrb[7].mxu1  ;;  %v1482_v42 = vadd.f32 %v1948_v39, %v1828_v38 }
 0x588   : > { %v1477_v41 = vadd.f32 %v1828_v38, %v1476_v40 }
 0x58a   : > { %1957 = vmatprep.mubr.msk.f32.mxu1 %vm1496_vm4, %v1477_v41 }
 0x58b   : > { %1958 = vmatmul.mubr.msk.f32.vlgmr.msra.gmra.mrb[12].mxu1 %vm1496_vm4, %v1482_v42 }
 0x65e   : > { %v1959_v47 = vpop.f32.mrb[12].mxu1 }
 0x65f   : > { %v1569_v48 = vpop.f32.mrb[13].mxu1  ;;  %v1575_v50 = vadd.f32 %v1959_v47, %v1831_v46 }
 0x660   : > { %v1570_v49 = vadd.f32 %v1831_v46, %v1569_v48 }
 0x662   : > { %1968 = vmatprep.mubr.msk.f32.mxu0 %vm1496_vm4, %v1570_v49 }
 0x663   : > { %1969 = vmatmul.mubr.msk.f32.vlgmr.msra.gmra.mrb[10].mxu0 %vm1496_vm4, %v1575_v50 }
 0x736   : > { %v1970_v52 = vpop.f32.mrb[10].mxu0 }
 0x737   : > { %v1667_v53 = vadd.f32 %v1970_v52, %v1834_v51  ;;  %v1661_v54 = vpop.f32.mrb[11].mxu0 }
 0x738   : > { %v1662_v55 = vadd.f32 %v1834_v51, %v1661_v54 }
 0x739   : > { %1671 = vst [vmem:[%s440_s27 + $0x8] sm:$0xff] %v1667_v53 }
 0x73a   : > { %1670 = vst [vmem:[%s440_s27] sm:$0xff] %v1662_v55 }
 0x73b PF: > { %s23_s25 = sadd.s32 1, %s2170_s25  }
 0x73c   : > { %p20_p4 = scmp.ge.s32.totalorder %s23_s25, 4  }
 0x73e   :  { %22 = sbr.rel (!%p20_p4) target bundleno = 1 (0x1), region = 102 }

</bundles_post_ra>
